<compile_context>
chip_gen: v5e
topology: v5e:2x2
jax: 0.10.0
libtpu: 0.0.40
codegen_flags: <defaults>
</compile_context>

<pallas_src>
import functools

import jax
import jax.numpy as jnp
from jax.experimental import pallas as pl
from jax.experimental.pallas import tpu as pltpu


# ----------------------------------------------------------------------------
# In-kernel math helpers (f32 elementwise paths)
# ----------------------------------------------------------------------------
def _ln(x, g, b, eps):
    mu = jnp.mean(x, axis=-1, keepdims=True)
    var = jnp.mean(jnp.square(x - mu), axis=-1, keepdims=True)
    return (x - mu) * jax.lax.rsqrt(var + eps) * g + b


def _gelu_exact(x):
    # BERT uses exact (erf) gelu.
    return 0.5 * x * (1.0 + jax.lax.erf(x * (1.0 / jnp.sqrt(2.0))))


# ----------------------------------------------------------------------------
# Fused encoder-layer kernel over the flattened (B*S, H) slab:
#   QKV -> per-(batch, head) attention folded through wo -> +res/LN -> FFN -> +res/LN
# ----------------------------------------------------------------------------
def _encoder_layer_kernel(h_ref, bias_ref, wqkv_ref, wo_ref, w1_ref, w2_ref,
                          vec_ref, o_ref, *, B, S, nh, dh, I, eps):
    H = nh * dh

    h_bf = h_ref[...]                       # (B*S, H) bf16 activations
    h = h_bf.astype(jnp.float32)            # f32 copy for residuals / LN

    # Packed per-layer vectors (one DMA): rows are
    #   0: bqkv (3H)  1: b1 (I)  2: bo  3: ln1_g  4: ln1_b  5: b2  6: ln2_g  7: ln2_b
    vec = vec_ref[...]
    bqkv = vec[0:1, :3 * H]
    b1 = vec[1:2, :I]
    bo = vec[2:3, :H]
    ln1g = vec[3:4, :H]
    ln1b = vec[4:5, :H]
    b2 = vec[5:6, :H]
    ln2g = vec[6:7, :H]
    ln2b = vec[7:8, :H]

    # --- fused QKV projection on the whole slab (bf16 x bf16 -> f32 on MXU) ---
    qkv = jnp.dot(h_bf, wqkv_ref[...],
                  preferred_element_type=jnp.float32) + bqkv
    q = qkv[:, 0 * H:1 * H]                 # softmax scale folded into wq/bq
    k = qkv[:, 1 * H:2 * H]
    v = qkv[:, 2 * H:3 * H]

    bias_all = bias_ref[...]                # (B*S, S) additive mask bias
    wo = wo_ref[...]                        # (H, H) bf16

    # --- multi-head attention per batch element; each head's context is
    #     folded directly through its wo row-slice (no lane concatenate) ---
    # TODO(synk): at BERT-base shapes replace this static (B, nh) unroll with a
    # head-major batched dot_general over a (B*nh, S, dh) layout.
    out_rows = []
    for b in range(B):
        rows = slice(b * S, (b + 1) * S)
        bias_b = bias_all[rows, :]          # (S, S), sublane-aligned slice
        acc_b = None
        for hd in range(nh):
            cols = slice(hd * dh, (hd + 1) * dh)
            qh = q[rows, cols].astype(jnp.bfloat16)          # (S, dh)
            kh = k[rows, cols].astype(jnp.bfloat16)
            vh = v[rows, cols].astype(jnp.bfloat16)
            # contract on the last axes of both operands: no k.T materialized
            s = jax.lax.dot_general(qh, kh, (((1,), (1,)), ((), ())),
                                    preferred_element_type=jnp.float32)
            s = s + bias_b
            s = s - jnp.max(s, axis=-1, keepdims=True)
            p = jnp.exp(s)
            p = p * pl.reciprocal(jnp.sum(p, axis=-1, keepdims=True),
                                  approx=True)
            ctx_h = jnp.dot(p.astype(jnp.bfloat16), vh,
                            preferred_element_type=jnp.float32)  # (S, dh)
            # fold this head through its slice of the output projection
            part = jnp.dot(ctx_h.astype(jnp.bfloat16), wo[cols, :],
                           preferred_element_type=jnp.float32)   # (S, H)
            acc_b = part if acc_b is None else acc_b + part
        out_rows.append(acc_b)
    attn_out = jnp.concatenate(out_rows, axis=0) + bo            # (B*S, H)

    # --- residual + LayerNorm (fused epilogue) ---
    h1 = _ln(attn_out + h, ln1g, ln1b, eps)

    # --- feed-forward (exact gelu) + residual + LayerNorm ---
    ffn = jnp.dot(h1.astype(jnp.bfloat16), w1_ref[...],
                  preferred_element_type=jnp.float32) + b1
    ffn = _gelu_exact(ffn)
    ffn = jnp.dot(ffn.astype(jnp.bfloat16), w2_ref[...],
                  preferred_element_type=jnp.float32) + b2
    h2 = _ln(ffn + h1, ln2g, ln2b, eps)

    o_ref[...] = h2.astype(o_ref.dtype)


def encoder_layer(h, mask_bias_rows, lp, cfg, *, B, S):
    """h: (B*S, H) bf16; mask_bias_rows: (B*S, S) f32 -> (B*S, H) bf16."""
    M, H = h.shape
    nh = cfg.heads
    dh = H // nh
    I = cfg.intermediate
    W = lp["vec"].shape[1]
    kernel = functools.partial(_encoder_layer_kernel,
                               B=B, S=S, nh=nh, dh=dh, I=I, eps=1e-12)

    def full(shape):
        # full-extent block, constant index map -> weight stays resident in VMEM
        return pl.BlockSpec(shape, lambda i: (0,) * len(shape))

    return pl.pallas_call(
        kernel,
        out_shape=jax.ShapeDtypeStruct((M, H), jnp.bfloat16),
        grid=(1,),
        in_specs=[
            full((M, H)),          # activations (bf16)
            full((M, S)),          # per-row additive mask bias (f32)
            full((H, 3 * H)),      # wqkv (bf16)
            full((H, H)),          # wo   (bf16)
            full((H, I)),          # w1   (bf16)
            full((I, H)),          # w2   (bf16)
            full((8, W)),          # packed biases / LN vectors (f32)
        ],
        out_specs=full((M, H)),
        compiler_params=pltpu.CompilerParams(
            dimension_semantics=("arbitrary",),
            vmem_limit_bytes=48 * 1024 * 1024),
    )(h, mask_bias_rows, lp["wqkv"], lp["wo"], lp["w1"], lp["w2"], lp["vec"])


# ----------------------------------------------------------------------------
# Model: parameters + forward
# ----------------------------------------------------------------------------
class Config:
    vocab_size = 100
    max_position = 16
    type_vocab = 2
    hidden = 32
    heads = 2
    layers = 2
    intermediate = 64
    num_class = 2
    dropout = 0.3  # inference mode: identity


def init_params(cfg, key):
    def nrm(k, shape, scale=0.02):
        return (scale * jax.random.normal(k, shape)).astype(jnp.float32)

    H, I = cfg.hidden, cfg.intermediate
    dh = H // cfg.heads
    attn_scale = 1.0 / (dh ** 0.5)
    W = max(3 * H, I, H)

    keys = iter(jax.random.split(key, 8 + 8 * cfg.layers))
    p = {
        "word_emb": nrm(next(keys), (cfg.vocab_size, H)),
        "pos_emb": nrm(next(keys), (cfg.max_position, H)),
        "type_emb": nrm(next(keys), (cfg.type_vocab, H)),
        "emb_ln_g": jnp.ones((H,), jnp.float32),
        "emb_ln_b": jnp.zeros((H,), jnp.float32),
        "layers": [],
        "pool_w": nrm(next(keys), (H, H)),                 # f32 (plain-JAX pooler)
        "pool_b": jnp.zeros((H,), jnp.float32),
        "cls_w": nrm(next(keys), (H, cfg.num_class)),
        "cls_b": jnp.zeros((cfg.num_class,), jnp.float32),
    }
    for _ in range(cfg.layers):
        # Softmax 1/sqrt(dh) is folded into the Q projection weight AND bias.
        wq = nrm(next(keys), (H, H)) * attn_scale
        wk = nrm(next(keys), (H, H))
        wv = nrm(next(keys), (H, H))
        bq = jnp.zeros((H,), jnp.float32) * attn_scale
        bk = jnp.zeros((H,), jnp.float32)
        bv = jnp.zeros((H,), jnp.float32)
        bqkv = jnp.concatenate([bq, bk, bv])
        b1 = jnp.zeros((I,), jnp.float32)
        bo = jnp.zeros((H,), jnp.float32)
        b2 = jnp.zeros((H,), jnp.float32)
        ln1_g = jnp.ones((H,), jnp.float32)
        ln1_b = jnp.zeros((H,), jnp.float32)
        ln2_g = jnp.ones((H,), jnp.float32)
        ln2_b = jnp.zeros((H,), jnp.float32)

        # Pack the eight small vectors into ONE (8, W) f32 input.
        vec = jnp.zeros((8, W), jnp.float32)
        vec = vec.at[0, :3 * H].set(bqkv)
        vec = vec.at[1, :I].set(b1)
        vec = vec.at[2, :H].set(bo)
        vec = vec.at[3, :H].set(ln1_g)
        vec = vec.at[4, :H].set(ln1_b)
        vec = vec.at[5, :H].set(b2)
        vec = vec.at[6, :H].set(ln2_g)
        vec = vec.at[7, :H].set(ln2_b)

        layer = {
            "wqkv": jnp.concatenate([wq, wk, wv], axis=1).astype(jnp.bfloat16),
            "wo": nrm(next(keys), (H, H)).astype(jnp.bfloat16),
            "w1": nrm(next(keys), (H, I)).astype(jnp.bfloat16),
            "w2": nrm(next(keys), (I, H)).astype(jnp.bfloat16),
            "vec": vec,
        }
        p["layers"].append(layer)
    return p


def bert_classifier_forward(params, input_ids, attention_mask, cfg):
    B, S = input_ids.shape
    H = cfg.hidden

    # --- embeddings + embedding LayerNorm in plain JAX (XLA fuses the gathers
    #     and the LN; a standalone Pallas LN launch was pure overhead) ---
    # token_type_ids default to 0 (HF AutoModel default when not passed).
    emb = (
        jnp.take(params["word_emb"], input_ids, axis=0)
        + params["pos_emb"][None, :S, :]
        + params["type_emb"][0][None, None, :]
    )  # (B, S, H) f32
    mu = jnp.mean(emb, axis=-1, keepdims=True)
    var = jnp.mean(jnp.square(emb - mu), axis=-1, keepdims=True)
    h = (emb - mu) * jax.lax.rsqrt(var + 1e-12) * params["emb_ln_g"] + params["emb_ln_b"]

    # bf16 activations between layers; flatten batch into the matmul M axis.
    h = h.astype(jnp.bfloat16).reshape(B * S, H)

    # additive attention mask bias, pre-broadcast to one row per query token:
    # row b*S+i carries batch b's (S,) key mask (0 attended / -1e9 masked).
    mask_bias = (1.0 - attention_mask.astype(jnp.float32)) * -1e9   # (B, S)
    mask_bias_rows = jnp.repeat(mask_bias, S, axis=0)                # (B*S, S)

    # --- encoder: ONE fused pallas_call per layer over the whole slab ---
    for lp in params["layers"]:
        h = encoder_layer(h, mask_bias_rows, lp, cfg, B=B, S=S)

    # --- pooler + classifier head in plain JAX (tiny; XLA fuses them) ---
    cls = h.reshape(B, S, H)[:, 0, :].astype(jnp.float32)            # (B, H)
    pooled = jnp.tanh(cls @ params["pool_w"] + params["pool_b"])

    # dropout(p=0.3): identity in inference mode.
    # TODO(synk): training-mode stochastic dropout (pltpu.prng_*) not applied.

    logits = pooled @ params["cls_w"] + params["cls_b"]              # (B, num_class)
    return logits


# ----------------------------------------------------------------------------
if __name__ == "__main__":
    cfg = Config()
    key = jax.random.PRNGKey(0)
    pkey, ikey = jax.random.split(key)

    params = init_params(cfg, pkey)

    B, S = 2, 8
    input_ids = jax.random.randint(ikey, (B, S), 0, cfg.vocab_size, dtype=jnp.int32)
    attention_mask = jnp.ones((B, S), jnp.int32).at[1, 6:].set(0)  # pad last 2 of row 1

    fwd = jax.jit(functools.partial(bert_classifier_forward, cfg=cfg))
    logits = fwd(params, input_ids, attention_mask)
    logits = jax.block_until_ready(logits)
    assert logits.shape == (B, cfg.num_class)
    assert bool(jnp.all(jnp.isfinite(logits)))
    print("KERNEL_OK")
</pallas_src>

<mosaic_0001>
module attributes {stable_mosaic.version = 11 : i64} {
  func.func @_encoder_layer_kernel(%arg0: i32, %arg1: memref<16x32xbf16, #tpu.memory_space<vmem>>, %arg2: memref<16x8xf32, #tpu.memory_space<vmem>>, %arg3: memref<32x96xbf16, #tpu.memory_space<vmem>>, %arg4: memref<32x32xbf16, #tpu.memory_space<vmem>>, %arg5: memref<32x64xbf16, #tpu.memory_space<vmem>>, %arg6: memref<64x32xbf16, #tpu.memory_space<vmem>>, %arg7: memref<8x96xf32, #tpu.memory_space<vmem>>, %arg8: memref<16x32xbf16, #tpu.memory_space<vmem>>) attributes {dimension_semantics = [#tpu.dimension_semantics<arbitrary>], iteration_bounds = array<i64: 1>, scalar_prefetch = 0 : i64, scratch_operands = 0 : i64, tpu.core_type = #tpu.core_type<tc>, window_params = [{pipeline_mode = #tpu.pipeline_mode<synchronous>, transform_indices = @transform_0, window_bounds = array<i64: 16, 32>}, {pipeline_mode = #tpu.pipeline_mode<synchronous>, transform_indices = @transform_1, window_bounds = array<i64: 16, 8>}, {pipeline_mode = #tpu.pipeline_mode<synchronous>, transform_indices = @transform_2, window_bounds = array<i64: 32, 96>}, {pipeline_mode = #tpu.pipeline_mode<synchronous>, transform_indices = @transform_3, window_bounds = array<i64: 32, 32>}, {pipeline_mode = #tpu.pipeline_mode<synchronous>, transform_indices = @transform_4, window_bounds = array<i64: 32, 64>}, {pipeline_mode = #tpu.pipeline_mode<synchronous>, transform_indices = @transform_5, window_bounds = array<i64: 64, 32>}, {pipeline_mode = #tpu.pipeline_mode<synchronous>, transform_indices = @transform_6, window_bounds = array<i64: 8, 96>}, {pipeline_mode = #tpu.pipeline_mode<synchronous>, transform_indices = @transform_7, window_bounds = array<i64: 16, 32>}]} {
    %c0 = arith.constant 0 : index
    %c0_0 = arith.constant 0 : index
    %0 = vector.load %arg1[%c0, %c0_0] : memref<16x32xbf16, #tpu.memory_space<vmem>>, vector<16x32xbf16>
    %1 = arith.extf %0 : vector<16x32xbf16> to vector<16x32xf32>
    %c0_1 = arith.constant 0 : index
    %c0_2 = arith.constant 0 : index
    %2 = vector.load %arg7[%c0_1, %c0_2] : memref<8x96xf32, #tpu.memory_space<vmem>>, vector<8x96xf32>
    %3 = vector.extract_strided_slice %2 {offsets = [0, 0], sizes = [1, 96], strides = [1, 1]} : vector<8x96xf32> to vector<1x96xf32>
    %4 = vector.extract_strided_slice %2 {offsets = [1, 0], sizes = [1, 64], strides = [1, 1]} : vector<8x96xf32> to vector<1x64xf32>
    %5 = vector.extract_strided_slice %2 {offsets = [2, 0], sizes = [1, 32], strides = [1, 1]} : vector<8x96xf32> to vector<1x32xf32>
    %6 = vector.extract_strided_slice %2 {offsets = [3, 0], sizes = [1, 32], strides = [1, 1]} : vector<8x96xf32> to vector<1x32xf32>
    %7 = vector.extract_strided_slice %2 {offsets = [4, 0], sizes = [1, 32], strides = [1, 1]} : vector<8x96xf32> to vector<1x32xf32>
    %8 = vector.extract_strided_slice %2 {offsets = [5, 0], sizes = [1, 32], strides = [1, 1]} : vector<8x96xf32> to vector<1x32xf32>
    %9 = vector.extract_strided_slice %2 {offsets = [6, 0], sizes = [1, 32], strides = [1, 1]} : vector<8x96xf32> to vector<1x32xf32>
    %10 = vector.extract_strided_slice %2 {offsets = [7, 0], sizes = [1, 32], strides = [1, 1]} : vector<8x96xf32> to vector<1x32xf32>
    %c0_3 = arith.constant 0 : index
    %c0_4 = arith.constant 0 : index
    %11 = vector.load %arg3[%c0_3, %c0_4] : memref<32x96xbf16, #tpu.memory_space<vmem>>, vector<32x96xbf16>
    %cst = arith.constant dense<0.000000e+00> : vector<16x96xf32>
    %12 = tpu.matmul %0, %11, %cst {dimension_numbers = #tpu.dot_dimension_numbers<[1], [0], [0], [1], [0, 0, 1, 1], [], []>} : vector<16x32xbf16>, vector<32x96xbf16>, vector<16x96xf32> -> vector<16x96xf32>
    %13 = vector.broadcast %3 : vector<1x96xf32> to vector<16x96xf32>
    %14 = arith.addf %12, %13 : vector<16x96xf32>
    %15 = vector.extract_strided_slice %14 {offsets = [0, 0], sizes = [16, 32], strides = [1, 1]} : vector<16x96xf32> to vector<16x32xf32>
    %16 = vector.extract_strided_slice %14 {offsets = [0, 32], sizes = [16, 32], strides = [1, 1]} : vector<16x96xf32> to vector<16x32xf32>
    %17 = vector.extract_strided_slice %14 {offsets = [0, 64], sizes = [16, 32], strides = [1, 1]} : vector<16x96xf32> to vector<16x32xf32>
    %c0_5 = arith.constant 0 : index
    %c0_6 = arith.constant 0 : index
    %18 = vector.load %arg2[%c0_5, %c0_6] : memref<16x8xf32, #tpu.memory_space<vmem>>, vector<16x8xf32>
    %c0_7 = arith.constant 0 : index
    %c0_8 = arith.constant 0 : index
    %19 = vector.load %arg4[%c0_7, %c0_8] : memref<32x32xbf16, #tpu.memory_space<vmem>>, vector<32x32xbf16>
    %20 = vector.extract_strided_slice %18 {offsets = [0, 0], sizes = [8, 8], strides = [1, 1]} : vector<16x8xf32> to vector<8x8xf32>
    %21 = vector.extract_strided_slice %15 {offsets = [0, 0], sizes = [8, 16], strides = [1, 1]} : vector<16x32xf32> to vector<8x16xf32>
    %22 = arith.truncf %21 : vector<8x16xf32> to vector<8x16xbf16>
    %23 = vector.extract_strided_slice %16 {offsets = [0, 0], sizes = [8, 16], strides = [1, 1]} : vector<16x32xf32> to vector<8x16xf32>
    %24 = arith.truncf %23 : vector<8x16xf32> to vector<8x16xbf16>
    %25 = vector.extract_strided_slice %17 {offsets = [0, 0], sizes = [8, 16], strides = [1, 1]} : vector<16x32xf32> to vector<8x16xf32>
    %26 = arith.truncf %25 : vector<8x16xf32> to vector<8x16xbf16>
    %cst_9 = arith.constant dense<0.000000e+00> : vector<8x8xf32>
    %27 = tpu.matmul %22, %24, %cst_9 {dimension_numbers = #tpu.dot_dimension_numbers<[1], [1], [0], [0], [0, 0, 1, 0], [], []>} : vector<8x16xbf16>, vector<8x16xbf16>, vector<8x8xf32> -> vector<8x8xf32>
    %28 = arith.addf %27, %20 : vector<8x8xf32>
    %cst_10 = arith.constant dense<0xFF800000> : vector<8xf32>
    %29 = vector.multi_reduction <maximumf>, %28, %cst_10 [1] : vector<8x8xf32> to vector<8xf32>
    %30 = vector.shape_cast %29 : vector<8xf32> to vector<8x1xf32>
    %31 = vector.broadcast %30 : vector<8x1xf32> to vector<8x8xf32>
    %32 = arith.subf %28, %31 : vector<8x8xf32>
    %33 = math.exp %32 : vector<8x8xf32>
    %cst_11 = arith.constant dense<0.000000e+00> : vector<8xf32>
    %34 = vector.multi_reduction <add>, %33, %cst_11 [1] : vector<8x8xf32> to vector<8xf32>
    %35 = vector.shape_cast %34 : vector<8xf32> to vector<8x1xf32>
    %36 = tpu.reciprocal %35 {approx = true} : vector<8x1xf32> -> vector<8x1xf32>
    %37 = vector.broadcast %36 : vector<8x1xf32> to vector<8x8xf32>
    %38 = arith.mulf %33, %37 : vector<8x8xf32>
    %39 = arith.truncf %38 : vector<8x8xf32> to vector<8x8xbf16>
    %cst_12 = arith.constant dense<0.000000e+00> : vector<8x16xf32>
    %40 = tpu.matmul %39, %26, %cst_12 {dimension_numbers = #tpu.dot_dimension_numbers<[1], [0], [0], [1], [0, 0, 1, 1], [], []>} : vector<8x8xbf16>, vector<8x16xbf16>, vector<8x16xf32> -> vector<8x16xf32>
    %41 = arith.truncf %40 : vector<8x16xf32> to vector<8x16xbf16>
    %42 = vector.extract_strided_slice %19 {offsets = [0, 0], sizes = [16, 32], strides = [1, 1]} : vector<32x32xbf16> to vector<16x32xbf16>
    %cst_13 = arith.constant dense<0.000000e+00> : vector<8x32xf32>
    %43 = tpu.matmul %41, %42, %cst_13 {dimension_numbers = #tpu.dot_dimension_numbers<[1], [0], [0], [1], [0, 0, 1, 1], [], []>} : vector<8x16xbf16>, vector<16x32xbf16>, vector<8x32xf32> -> vector<8x32xf32>
    %44 = vector.extract_strided_slice %15 {offsets = [0, 16], sizes = [8, 16], strides = [1, 1]} : vector<16x32xf32> to vector<8x16xf32>
    %45 = arith.truncf %44 : vector<8x16xf32> to vector<8x16xbf16>
    %46 = vector.extract_strided_slice %16 {offsets = [0, 16], sizes = [8, 16], strides = [1, 1]} : vector<16x32xf32> to vector<8x16xf32>
    %47 = arith.truncf %46 : vector<8x16xf32> to vector<8x16xbf16>
    %48 = vector.extract_strided_slice %17 {offsets = [0, 16], sizes = [8, 16], strides = [1, 1]} : vector<16x32xf32> to vector<8x16xf32>
    %49 = arith.truncf %48 : vector<8x16xf32> to vector<8x16xbf16>
    %cst_14 = arith.constant dense<0.000000e+00> : vector<8x8xf32>
    %50 = tpu.matmul %45, %47, %cst_14 {dimension_numbers = #tpu.dot_dimension_numbers<[1], [1], [0], [0], [0, 0, 1, 0], [], []>} : vector<8x16xbf16>, vector<8x16xbf16>, vector<8x8xf32> -> vector<8x8xf32>
    %51 = arith.addf %50, %20 : vector<8x8xf32>
    %cst_15 = arith.constant dense<0xFF800000> : vector<8xf32>
    %52 = vector.multi_reduction <maximumf>, %51, %cst_15 [1] : vector<8x8xf32> to vector<8xf32>
    %53 = vector.shape_cast %52 : vector<8xf32> to vector<8x1xf32>
    %54 = vector.broadcast %53 : vector<8x1xf32> to vector<8x8xf32>
    %55 = arith.subf %51, %54 : vector<8x8xf32>
    %56 = math.exp %55 : vector<8x8xf32>
    %cst_16 = arith.constant dense<0.000000e+00> : vector<8xf32>
    %57 = vector.multi_reduction <add>, %56, %cst_16 [1] : vector<8x8xf32> to vector<8xf32>
    %58 = vector.shape_cast %57 : vector<8xf32> to vector<8x1xf32>
    %59 = tpu.reciprocal %58 {approx = true} : vector<8x1xf32> -> vector<8x1xf32>
    %60 = vector.broadcast %59 : vector<8x1xf32> to vector<8x8xf32>
    %61 = arith.mulf %56, %60 : vector<8x8xf32>
    %62 = arith.truncf %61 : vector<8x8xf32> to vector<8x8xbf16>
    %cst_17 = arith.constant dense<0.000000e+00> : vector<8x16xf32>
    %63 = tpu.matmul %62, %49, %cst_17 {dimension_numbers = #tpu.dot_dimension_numbers<[1], [0], [0], [1], [0, 0, 1, 1], [], []>} : vector<8x8xbf16>, vector<8x16xbf16>, vector<8x16xf32> -> vector<8x16xf32>
    %64 = arith.truncf %63 : vector<8x16xf32> to vector<8x16xbf16>
    %65 = vector.extract_strided_slice %19 {offsets = [16, 0], sizes = [16, 32], strides = [1, 1]} : vector<32x32xbf16> to vector<16x32xbf16>
    %cst_18 = arith.constant dense<0.000000e+00> : vector<8x32xf32>
    %66 = tpu.matmul %64, %65, %cst_18 {dimension_numbers = #tpu.dot_dimension_numbers<[1], [0], [0], [1], [0, 0, 1, 1], [], []>} : vector<8x16xbf16>, vector<16x32xbf16>, vector<8x32xf32> -> vector<8x32xf32>
    %67 = arith.addf %43, %66 : vector<8x32xf32>
    %68 = vector.extract_strided_slice %18 {offsets = [8, 0], sizes = [8, 8], strides = [1, 1]} : vector<16x8xf32> to vector<8x8xf32>
    %69 = vector.extract_strided_slice %15 {offsets = [8, 0], sizes = [8, 16], strides = [1, 1]} : vector<16x32xf32> to vector<8x16xf32>
    %70 = arith.truncf %69 : vector<8x16xf32> to vector<8x16xbf16>
    %71 = vector.extract_strided_slice %16 {offsets = [8, 0], sizes = [8, 16], strides = [1, 1]} : vector<16x32xf32> to vector<8x16xf32>
    %72 = arith.truncf %71 : vector<8x16xf32> to vector<8x16xbf16>
    %73 = vector.extract_strided_slice %17 {offsets = [8, 0], sizes = [8, 16], strides = [1, 1]} : vector<16x32xf32> to vector<8x16xf32>
    %74 = arith.truncf %73 : vector<8x16xf32> to vector<8x16xbf16>
    %cst_19 = arith.constant dense<0.000000e+00> : vector<8x8xf32>
    %75 = tpu.matmul %70, %72, %cst_19 {dimension_numbers = #tpu.dot_dimension_numbers<[1], [1], [0], [0], [0, 0, 1, 0], [], []>} : vector<8x16xbf16>, vector<8x16xbf16>, vector<8x8xf32> -> vector<8x8xf32>
    %76 = arith.addf %75, %68 : vector<8x8xf32>
    %cst_20 = arith.constant dense<0xFF800000> : vector<8xf32>
    %77 = vector.multi_reduction <maximumf>, %76, %cst_20 [1] : vector<8x8xf32> to vector<8xf32>
    %78 = vector.shape_cast %77 : vector<8xf32> to vector<8x1xf32>
    %79 = vector.broadcast %78 : vector<8x1xf32> to vector<8x8xf32>
    %80 = arith.subf %76, %79 : vector<8x8xf32>
    %81 = math.exp %80 : vector<8x8xf32>
    %cst_21 = arith.constant dense<0.000000e+00> : vector<8xf32>
    %82 = vector.multi_reduction <add>, %81, %cst_21 [1] : vector<8x8xf32> to vector<8xf32>
    %83 = vector.shape_cast %82 : vector<8xf32> to vector<8x1xf32>
    %84 = tpu.reciprocal %83 {approx = true} : vector<8x1xf32> -> vector<8x1xf32>
    %85 = vector.broadcast %84 : vector<8x1xf32> to vector<8x8xf32>
    %86 = arith.mulf %81, %85 : vector<8x8xf32>
    %87 = arith.truncf %86 : vector<8x8xf32> to vector<8x8xbf16>
    %cst_22 = arith.constant dense<0.000000e+00> : vector<8x16xf32>
    %88 = tpu.matmul %87, %74, %cst_22 {dimension_numbers = #tpu.dot_dimension_numbers<[1], [0], [0], [1], [0, 0, 1, 1], [], []>} : vector<8x8xbf16>, vector<8x16xbf16>, vector<8x16xf32> -> vector<8x16xf32>
    %89 = arith.truncf %88 : vector<8x16xf32> to vector<8x16xbf16>
    %90 = vector.extract_strided_slice %19 {offsets = [0, 0], sizes = [16, 32], strides = [1, 1]} : vector<32x32xbf16> to vector<16x32xbf16>
    %cst_23 = arith.constant dense<0.000000e+00> : vector<8x32xf32>
    %91 = tpu.matmul %89, %90, %cst_23 {dimension_numbers = #tpu.dot_dimension_numbers<[1], [0], [0], [1], [0, 0, 1, 1], [], []>} : vector<8x16xbf16>, vector<16x32xbf16>, vector<8x32xf32> -> vector<8x32xf32>
    %92 = vector.extract_strided_slice %15 {offsets = [8, 16], sizes = [8, 16], strides = [1, 1]} : vector<16x32xf32> to vector<8x16xf32>
    %93 = arith.truncf %92 : vector<8x16xf32> to vector<8x16xbf16>
    %94 = vector.extract_strided_slice %16 {offsets = [8, 16], sizes = [8, 16], strides = [1, 1]} : vector<16x32xf32> to vector<8x16xf32>
    %95 = arith.truncf %94 : vector<8x16xf32> to vector<8x16xbf16>
    %96 = vector.extract_strided_slice %17 {offsets = [8, 16], sizes = [8, 16], strides = [1, 1]} : vector<16x32xf32> to vector<8x16xf32>
    %97 = arith.truncf %96 : vector<8x16xf32> to vector<8x16xbf16>
    %cst_24 = arith.constant dense<0.000000e+00> : vector<8x8xf32>
    %98 = tpu.matmul %93, %95, %cst_24 {dimension_numbers = #tpu.dot_dimension_numbers<[1], [1], [0], [0], [0, 0, 1, 0], [], []>} : vector<8x16xbf16>, vector<8x16xbf16>, vector<8x8xf32> -> vector<8x8xf32>
    %99 = arith.addf %98, %68 : vector<8x8xf32>
    %cst_25 = arith.constant dense<0xFF800000> : vector<8xf32>
    %100 = vector.multi_reduction <maximumf>, %99, %cst_25 [1] : vector<8x8xf32> to vector<8xf32>
    %101 = vector.shape_cast %100 : vector<8xf32> to vector<8x1xf32>
    %102 = vector.broadcast %101 : vector<8x1xf32> to vector<8x8xf32>
    %103 = arith.subf %99, %102 : vector<8x8xf32>
    %104 = math.exp %103 : vector<8x8xf32>
    %cst_26 = arith.constant dense<0.000000e+00> : vector<8xf32>
    %105 = vector.multi_reduction <add>, %104, %cst_26 [1] : vector<8x8xf32> to vector<8xf32>
    %106 = vector.shape_cast %105 : vector<8xf32> to vector<8x1xf32>
    %107 = tpu.reciprocal %106 {approx = true} : vector<8x1xf32> -> vector<8x1xf32>
    %108 = vector.broadcast %107 : vector<8x1xf32> to vector<8x8xf32>
    %109 = arith.mulf %104, %108 : vector<8x8xf32>
    %110 = arith.truncf %109 : vector<8x8xf32> to vector<8x8xbf16>
    %cst_27 = arith.constant dense<0.000000e+00> : vector<8x16xf32>
    %111 = tpu.matmul %110, %97, %cst_27 {dimension_numbers = #tpu.dot_dimension_numbers<[1], [0], [0], [1], [0, 0, 1, 1], [], []>} : vector<8x8xbf16>, vector<8x16xbf16>, vector<8x16xf32> -> vector<8x16xf32>
    %112 = arith.truncf %111 : vector<8x16xf32> to vector<8x16xbf16>
    %113 = vector.extract_strided_slice %19 {offsets = [16, 0], sizes = [16, 32], strides = [1, 1]} : vector<32x32xbf16> to vector<16x32xbf16>
    %cst_28 = arith.constant dense<0.000000e+00> : vector<8x32xf32>
    %114 = tpu.matmul %112, %113, %cst_28 {dimension_numbers = #tpu.dot_dimension_numbers<[1], [0], [0], [1], [0, 0, 1, 1], [], []>} : vector<8x16xbf16>, vector<16x32xbf16>, vector<8x32xf32> -> vector<8x32xf32>
    %115 = arith.addf %91, %114 : vector<8x32xf32>
    %116 = tpu.concatenate %67, %115 in 0 : vector<8x32xf32>, vector<8x32xf32> -> vector<16x32xf32>
    %117 = vector.broadcast %5 : vector<1x32xf32> to vector<16x32xf32>
    %118 = arith.addf %116, %117 : vector<16x32xf32>
    %119 = arith.addf %118, %1 : vector<16x32xf32>
    %cst_29 = arith.constant dense<0.000000e+00> : vector<16xf32>
    %120 = vector.multi_reduction <add>, %119, %cst_29 [1] : vector<16x32xf32> to vector<16xf32>
    %121 = vector.shape_cast %120 : vector<16xf32> to vector<16x1xf32>
    %cst_30 = arith.constant 3.200000e+01 : f32
    %122 = vector.broadcast %cst_30 : f32 to vector<16x1xf32>
    %123 = arith.divf %121, %122 : vector<16x1xf32>
    %124 = vector.broadcast %123 : vector<16x1xf32> to vector<16x32xf32>
    %125 = arith.subf %119, %124 : vector<16x32xf32>
    %126 = arith.mulf %125, %125 : vector<16x32xf32>
    %cst_31 = arith.constant dense<0.000000e+00> : vector<16xf32>
    %127 = vector.multi_reduction <add>, %126, %cst_31 [1] : vector<16x32xf32> to vector<16xf32>
    %128 = vector.shape_cast %127 : vector<16xf32> to vector<16x1xf32>
    %cst_32 = arith.constant 3.200000e+01 : f32
    %129 = vector.broadcast %cst_32 : f32 to vector<16x1xf32>
    %130 = arith.divf %128, %129 : vector<16x1xf32>
    %131 = vector.broadcast %123 : vector<16x1xf32> to vector<16x32xf32>
    %132 = arith.subf %119, %131 : vector<16x32xf32>
    %cst_33 = arith.constant 9.99999996E-13 : f32
    %133 = vector.broadcast %cst_33 : f32 to vector<16x1xf32>
    %134 = arith.addf %130, %133 : vector<16x1xf32>
    %135 = math.rsqrt %134 : vector<16x1xf32>
    %136 = vector.broadcast %135 : vector<16x1xf32> to vector<16x32xf32>
    %137 = arith.mulf %132, %136 : vector<16x32xf32>
    %138 = vector.broadcast %6 : vector<1x32xf32> to vector<16x32xf32>
    %139 = arith.mulf %137, %138 : vector<16x32xf32>
    %140 = vector.broadcast %7 : vector<1x32xf32> to vector<16x32xf32>
    %141 = arith.addf %139, %140 : vector<16x32xf32>
    %142 = arith.truncf %141 : vector<16x32xf32> to vector<16x32xbf16>
    %c0_34 = arith.constant 0 : index
    %c0_35 = arith.constant 0 : index
    %143 = vector.load %arg5[%c0_34, %c0_35] : memref<32x64xbf16, #tpu.memory_space<vmem>>, vector<32x64xbf16>
    %cst_36 = arith.constant dense<0.000000e+00> : vector<16x64xf32>
    %144 = tpu.matmul %142, %143, %cst_36 {dimension_numbers = #tpu.dot_dimension_numbers<[1], [0], [0], [1], [0, 0, 1, 1], [], []>} : vector<16x32xbf16>, vector<32x64xbf16>, vector<16x64xf32> -> vector<16x64xf32>
    %145 = vector.broadcast %4 : vector<1x64xf32> to vector<16x64xf32>
    %146 = arith.addf %144, %145 : vector<16x64xf32>
    %cst_37 = arith.constant 5.000000e-01 : f32
    %147 = vector.broadcast %cst_37 : f32 to vector<16x64xf32>
    %148 = arith.mulf %147, %146 : vector<16x64xf32>
    %cst_38 = arith.constant 2.000000e+00 : f32
    %149 = math.sqrt %cst_38 : f32
    %cst_39 = arith.constant 1.000000e+00 : f32
    %150 = arith.divf %cst_39, %149 : f32
    %151 = vector.broadcast %150 : f32 to vector<16x64xf32>
    %152 = arith.mulf %146, %151 : vector<16x64xf32>
    %153 = math.erf %152 : vector<16x64xf32>
    %cst_40 = arith.constant 1.000000e+00 : f32
    %154 = vector.broadcast %cst_40 : f32 to vector<16x64xf32>
    %155 = arith.addf %154, %153 : vector<16x64xf32>
    %156 = arith.mulf %148, %155 : vector<16x64xf32>
    %157 = arith.truncf %156 : vector<16x64xf32> to vector<16x64xbf16>
    %c0_41 = arith.constant 0 : index
    %c0_42 = arith.constant 0 : index
    %158 = vector.load %arg6[%c0_41, %c0_42] : memref<64x32xbf16, #tpu.memory_space<vmem>>, vector<64x32xbf16>
    %cst_43 = arith.constant dense<0.000000e+00> : vector<16x32xf32>
    %159 = tpu.matmul %157, %158, %cst_43 {dimension_numbers = #tpu.dot_dimension_numbers<[1], [0], [0], [1], [0, 0, 1, 1], [], []>} : vector<16x64xbf16>, vector<64x32xbf16>, vector<16x32xf32> -> vector<16x32xf32>
    %160 = vector.broadcast %8 : vector<1x32xf32> to vector<16x32xf32>
    %161 = arith.addf %159, %160 : vector<16x32xf32>
    %162 = arith.addf %161, %141 : vector<16x32xf32>
    %cst_44 = arith.constant dense<0.000000e+00> : vector<16xf32>
    %163 = vector.multi_reduction <add>, %162, %cst_44 [1] : vector<16x32xf32> to vector<16xf32>
    %164 = vector.shape_cast %163 : vector<16xf32> to vector<16x1xf32>
    %cst_45 = arith.constant 3.200000e+01 : f32
    %165 = vector.broadcast %cst_45 : f32 to vector<16x1xf32>
    %166 = arith.divf %164, %165 : vector<16x1xf32>
    %167 = vector.broadcast %166 : vector<16x1xf32> to vector<16x32xf32>
    %168 = arith.subf %162, %167 : vector<16x32xf32>
    %169 = arith.mulf %168, %168 : vector<16x32xf32>
    %cst_46 = arith.constant dense<0.000000e+00> : vector<16xf32>
    %170 = vector.multi_reduction <add>, %169, %cst_46 [1] : vector<16x32xf32> to vector<16xf32>
    %171 = vector.shape_cast %170 : vector<16xf32> to vector<16x1xf32>
    %cst_47 = arith.constant 3.200000e+01 : f32
    %172 = vector.broadcast %cst_47 : f32 to vector<16x1xf32>
    %173 = arith.divf %171, %172 : vector<16x1xf32>
    %174 = vector.broadcast %166 : vector<16x1xf32> to vector<16x32xf32>
    %175 = arith.subf %162, %174 : vector<16x32xf32>
    %cst_48 = arith.constant 9.99999996E-13 : f32
    %176 = vector.broadcast %cst_48 : f32 to vector<16x1xf32>
    %177 = arith.addf %173, %176 : vector<16x1xf32>
    %178 = math.rsqrt %177 : vector<16x1xf32>
    %179 = vector.broadcast %178 : vector<16x1xf32> to vector<16x32xf32>
    %180 = arith.mulf %175, %179 : vector<16x32xf32>
    %181 = vector.broadcast %9 : vector<1x32xf32> to vector<16x32xf32>
    %182 = arith.mulf %180, %181 : vector<16x32xf32>
    %183 = vector.broadcast %10 : vector<1x32xf32> to vector<16x32xf32>
    %184 = arith.addf %182, %183 : vector<16x32xf32>
    %185 = arith.truncf %184 : vector<16x32xf32> to vector<16x32xbf16>
    %c0_49 = arith.constant 0 : index
    %c0_50 = arith.constant 0 : index
    %186 = vector.load %arg8[%c0_49, %c0_50] : memref<16x32xbf16, #tpu.memory_space<vmem>>, vector<16x32xbf16>
    tpu.vector_store %arg8[%c0_49, %c0_50], %185 {strides = array<i32>} : memref<16x32xbf16, #tpu.memory_space<vmem>>, vector<16x32xbf16>,
    return
  }
  func.func @transform_0(%arg0: i32) -> (i32, i32) {
    %c0_i32 = arith.constant 0 : i32
    %c0_i32_0 = arith.constant 0 : i32
    %c0_i32_1 = arith.constant 0 : i32
    return %c0_i32, %c0_i32_0 : i32, i32
  }
  func.func @transform_1(%arg0: i32) -> (i32, i32) {
    %c0_i32 = arith.constant 0 : i32
    %c0_i32_0 = arith.constant 0 : i32
    %c0_i32_1 = arith.constant 0 : i32
    return %c0_i32, %c0_i32_0 : i32, i32
  }
  func.func @transform_2(%arg0: i32) -> (i32, i32) {
    %c0_i32 = arith.constant 0 : i32
    %c0_i32_0 = arith.constant 0 : i32
    %c0_i32_1 = arith.constant 0 : i32
    return %c0_i32, %c0_i32_0 : i32, i32
  }
  func.func @transform_3(%arg0: i32) -> (i32, i32) {
    %c0_i32 = arith.constant 0 : i32
    %c0_i32_0 = arith.constant 0 : i32
    %c0_i32_1 = arith.constant 0 : i32
    return %c0_i32, %c0_i32_0 : i32, i32
  }
  func.func @transform_4(%arg0: i32) -> (i32, i32) {
    %c0_i32 = arith.constant 0 : i32
    %c0_i32_0 = arith.constant 0 : i32
    %c0_i32_1 = arith.constant 0 : i32
    return %c0_i32, %c0_i32_0 : i32, i32
  }
  func.func @transform_5(%arg0: i32) -> (i32, i32) {
    %c0_i32 = arith.constant 0 : i32
    %c0_i32_0 = arith.constant 0 : i32
    %c0_i32_1 = arith.constant 0 : i32
    return %c0_i32, %c0_i32_0 : i32, i32
  }
  func.func @transform_6(%arg0: i32) -> (i32, i32) {
    %c0_i32 = arith.constant 0 : i32
    %c0_i32_0 = arith.constant 0 : i32
    %c0_i32_1 = arith.constant 0 : i32
    return %c0_i32, %c0_i32_0 : i32, i32
  }
  func.func @transform_7(%arg0: i32) -> (i32, i32) {
    %c0_i32 = arith.constant 0 : i32
    %c0_i32_0 = arith.constant 0 : i32
    %c0_i32_1 = arith.constant 0 : i32
    return %c0_i32, %c0_i32_0 : i32, i32
  }
}

</mosaic_0001>

<bundles_post_ra>
// kernel: bert_classifier_forward.2
= control target key start
LH: loop header
LB: loop body
LE: loop exit
PB: predicated region body
PF: predicated region fallthrough
CT: control target
= control target key end

     0   :  { %vm54_vm0 = vcmask 261120   ;;  %s791_s9 = smov 112   ;;  %s793_s10 = smov 80   ;;  %vm82_vm1 = vcmask 130048   ;;  %vm120_vm2 = vcmask 1043456   ;;  %vm102_vm3 = vcmask 64512   ;;  %s1003_s2 = inlined_call_operand.vmem [shape: bf16[32,96], index: 2, kind: input, shape index: {}]   ;;  %s1004_s0 = inlined_call_operand.vmem [shape: bf16[16,32], index: 0, kind: input, shape index: {}]   ;;  %s1005_s6 = inlined_call_operand.vmem [shape: f32[8,96], index: 6, kind: input, shape index: {}]   ;;  %s1006_s3 = inlined_call_operand.vmem [shape: bf16[32,32], index: 3, kind: input, shape index: {}]   ;;  %s1007_s1 = inlined_call_operand.vmem [shape: f32[16,8], index: 1, kind: input, shape index: {}]   ;;  %s1008_s4 = inlined_call_operand.vmem [shape: bf16[32,64], index: 4, kind: input, shape index: {}]   ;;  %s1009_s5 = inlined_call_operand.vmem [shape: bf16[64,32], index: 5, kind: input, shape index: {}]   ;;  %s1010_s7 = inlined_call_operand.vmem [shape: bf16[16,32], index: 7, kind: output, shape index: {}]  }
   0x1   :  { %v746_v0 = vld [vmem:[%s1003_s2 + $0x8] sm:$0xff]  ;;  %v745_v1 = vld [vmem:[%s1003_s2] sm:$0xff]  ;;  %s792_s2 = smov 96   ;;  %s794_s11 = smov 64  }
   0x2   :  { %64 = vmatpush.bf16.msra.mxu0 %v746_v0  ;;  %v744_v2 = vld [vmem:[%s1004_s0] sm:$0xff]  ;;  %s795_s12 = smov 48   ;;  %v748_v11 = vld [vmem:[%s1006_s3 + $0x8] sm:$0xff] }
   0x3   :  { %v850_v3 = vld [vmem:[%s1005_s6] sm:$0xff]  ;;  %v73_v58 = vld [vmem:[%s1007_s1 + $0x8] sm:$0xff] }
   0x4   :  { %v36_v4 = vperm.slane %v850_v3, 0  ;;  %v72_v23 = vld [vmem:[%s1007_s1] sm:$0xff] }
   0x5   :  { %v887_v52 = vld [vmem:[%s1006_s3] sm:$0xff] }
   0x6   :  { %65 = vmatpush.bf16.msra.mxu0 %v745_v1 }
   0x9   :  { %695 = vmatmul.msk.bf16.vlgmr.msra.gmra.mxu0 %vm54_vm0, %v744_v2 }
   0xa   :  { %211 = vmatpush.bf16.msrb.mxu0 %v748_v11 }
  0x86   :  { %v67_v5 = vpop.f32.mrf.mxu0 }
  0x87   :  { %v68_v6 = vadd.f32 %v67_v5, %v36_v4 }
  0x89   :  { %v78_v7 = vpack.c.bf16 %v68_v6, %v68_v6 }
  0x8b   :  { %138 = vrot.lane.b32.xlu1 %v78_v7, %s791_s9  ;;  %80 = vrot.lane.b32.xlu0 %v78_v7, %s792_s2 }
  0x8e   :  { %v69_v8 = vpop.f32.mrf.mxu0 }
  0x8f   :  { %v70_v9 = vadd.f32 %v69_v8, %v36_v4  ;;  %v385_v8 = vperm.slane %v850_v3, 2 }
  0x91   :  { %v856_v10 = vpack.c.bf16 %v70_v9, %v70_v9 }
  0x93   :  { %140 = vrot.lane.b32.xlu0 %v78_v7, %s793_s10 }
  0x9b   :  { %115 = vrot.lane.b32.xlu0 %v78_v7, %s794_s11 }
  0xa3   :  { %173 = vrot.lane.b32.xlu0 %v78_v7, %s795_s12 }
  0xab   :  { %298 = vrot.lane.b32.xlu0 %v856_v10, %s793_s10 }
  0xb3   :  { %296 = vrot.lane.b32.xlu0 %v856_v10, %s791_s9 }
  0xfd   :  { %v81_v12 = vpop.permute.xlu0 %80  ;;  %v139_v16 = vpop.permute.xlu1 %138 }
  0xfe   :  { %v87_v13 = vsel %vm82_vm1, %v81_v12, 0 }
  0xff   :  { %96 = vmatpush.bf16.xpose.msra.mxu1 %v87_v13 }
 0x105   :  { %v141_v14 = vpop.permute.xlu0 %140 }
 0x106   :  { %696 = vmatmul.msk.bf16.vlgmr.msra.gmra.mxu1 %vm82_vm1, %v78_v7  ;;  %v146_v15 = vsel %vm82_vm1, %v141_v14, 0  ;;  %v900_v7 = vld [vmem:[%s1004_s0] sm:$0xff]  }
 0x107   :  { %155 = vmatpush.bf16.xpose.msra.mxu3 %v146_v15  ;;  %233 = vmatpush.bf16.msrb.mxu1 %v887_v52  ;;  %v29_v12 = vunpack.c.l.bf16 %v900_v7 }
 0x10d   :  { %v116_v17 = vpop.permute.xlu0 %115 }
 0x10e   :  { %698 = vmatmul.msk.bf16.vlgmr.msra.gmra.mxu3 %vm82_vm1, %v139_v16  ;;  %v122_v18 = vsel %vm120_vm2, %v116_v17, 0 }
 0x10f   :  { %131 = vmatpush.bf16.msra.mxu2 %v122_v18 }
 0x115   :  { %v174_v19 = vpop.permute.xlu0 %173 }
 0x116   :  { %v179_v20 = vsel %vm120_vm2, %v174_v19, 0 }
 0x117   :  { %188 = vmatpush.bf16.msrb.mxu2 %v179_v20 }
 0x11d   :  { %v299_v21 = vpop.permute.xlu0 %298 }
 0x11e   :  { %v304_v22 = vsel %vm82_vm1, %v299_v21, 0 }
 0x11f   :  { %313 = vmatpush.bf16.xpose.msra.mxu0 %v304_v22 }
 0x125   :  { %v297_v0 = vpop.permute.xlu0 %296 }
 0x183   :  { %v98_v24 = vpop.f32.mrf.mxu1 }
 0x184   :  { %v99_v25 = vadd.f32 %v98_v24, %v72_v23 }
 0x186   :  { %v103_v26 = vsel %vm102_vm3, %v99_v25, -inf }
 0x187   :  { %104 = vmax.xlane.f32.xlu1 %v103_v26 }
 0x18b   :  { %v100_v27 = vpop.f32.mrf.mxu1 }
 0x191   :  { %v157_v28 = vpop.f32.mrf.mxu3 }
 0x192   :  { %v158_v29 = vadd.f32 %v157_v28, %v72_v23  ;;  %v796_v23 = vmov 32.0  }
 0x194   :  { %v161_v30 = vsel %vm102_vm3, %v158_v29, -inf }
 0x195   :  { %162 = vmax.xlane.f32.xlu2 %v161_v30 }
 0x199   :  { %v159_v31 = vpop.f32.mrf.mxu3 }
 0x1fa   :  { %v105_v32 = vpop.xlane.xlu1 %104 }
 0x1fb   :  { %v106_v33 = vsub.f32 %v99_v25, %v105_v32 }
 0x1fd   :  { %v107_v34 = vmul.f32 1.442695, %v106_v33 }
 0x1ff   :  { %761 = vpow2.f32 %v107_v34 }
 0x205   :  { %v762_v35 = vpop.eup %761 }
 0x206   :  { %v109_v36 = vsel %vm102_vm3, %v762_v35, 0.0 }
 0x207   :  { %110 = vadd.xlane.f32.xlu2 %v109_v36 }
 0x208   :  { %v163_v37 = vpop.xlane.xlu2 %162 }
 0x209   :  { %v164_v38 = vsub.f32 %v158_v29, %v163_v37 }
 0x20b   :  { %v165_v39 = vmul.f32 1.442695, %v164_v38 }
 0x20d   :  { %763 = vpow2.f32 %v165_v39 }
 0x213   :  { %v764_v40 = vpop.eup %763 }
 0x214   :  { %v167_v41 = vsel %vm102_vm3, %v764_v40, 0.0 }
 0x215   :  { %168 = vadd.xlane.f32.xlu2 %v167_v41 }
 0x22d   :  { %241 = vrot.lane.b32.xlu2 %v856_v10, %s792_s2 }
 0x27a   :  { %v111_v42 = vpop.xlane.xlu2 %110 }
 0x27b   :  { %765 = vrcp.f32 %v111_v42 }
 0x281   :  { %v766_v43 = vpop.eup %765 }
 0x282   :  { %v113_v44 = vmul.f32 %v766_v43, %v762_v35 }
 0x284   :  { %v114_v45 = vpack.c.bf16 %v113_v44, %v113_v44 }
 0x286   :  { %697 = vmatmul.msk.bf16.vlgmr.msra.gmra.mxu2 %vm102_vm3, %v114_v45 }
 0x288   :  { %v169_v46 = vpop.xlane.xlu2 %168 }
 0x289   :  { %767 = vrcp.f32 %v169_v46 }
 0x28f   :  { %v768_v47 = vpop.eup %767 }
 0x290   :  { %v171_v48 = vmul.f32 %v768_v47, %v764_v40  ;;  %v242_v49 = vpop.permute.xlu2 %241 }
 0x291   :  { %v247_v50 = vsel %vm82_vm1, %v242_v49, 0 }
 0x292   :  { %256 = vmatpush.bf16.xpose.msrb.mxu3 %v247_v50  ;;  %v172_v51 = vpack.c.bf16 %v171_v48, %v171_v48 }
 0x296   :  { %699 = vmatmul.msk.bf16.vlgmr.msrb.gmra.mxu2 %vm102_vm3, %v172_v51 }
 0x299   :  { %710 = vmatmul.msk.bf16.vlgmr.msrb.gmra.mxu3 %vm82_vm1, %v856_v10 }
 0x29a   :  { %363 = vmatpush.bf16.msra.mxu3 %v748_v11 }
 0x309   :  { %v133_v53 = vpop.f32.mrf.mxu2 }
 0x30a   :  { %v137_v54 = vpack.c.bf16 %v133_v53, %v133_v53 }
 0x30c   :  { %709 = vmatmul.msk.bf16.vlgmr.msrb.gmra.mxu1 %vm82_vm1, %v137_v54 }
 0x311   :  { %v135_v55 = vpop.f32.mrf.mxu2 }
 0x319   :  { %v190_v56 = vpop.f32.mrf.mxu2 }
 0x31a   :  { %v194_v57 = vpack.c.bf16 %v190_v56, %v190_v56 }
 0x31c   :  { %704 = vmatmul.msk.bf16.vlgmr.msrb.gmra.mxu0 %vm82_vm1, %v194_v57  ;;  %v258_v59 = vpop.f32.mrf.mxu3 }
 0x31d   :  { %v259_v60 = vadd.f32 %v258_v59, %v73_v58 }
 0x31f   :  { %v262_v61 = vsel %vm102_vm3, %v259_v60, -inf }
 0x320   :  { %263 = vmax.xlane.f32.xlu0 %v262_v61 }
 0x321   :  { %v192_v62 = vpop.f32.mrf.mxu2 }
 0x322   :  { %v30_v62 = vunpack.c.h.bf16 %v900_v7 }
 0x324   :  { %v260_v63 = vpop.f32.mrf.mxu3 }
 0x32c   :  { %712 = vmatmul.msk.bf16.vlgmr.msra.gmra.mxu0 %vm82_vm1, %v297_v0 }
 0x389   :  { %v235_v1 = vpop.f32.mrf.mxu1 }
 0x391   :  { %v237_v2 = vpop.f32.mrf.mxu1 }
 0x393   :  { %v264_v4 = vpop.xlane.xlu0 %263 }
 0x394   :  { %v265_v5 = vsub.f32 %v259_v60, %v264_v4 }
 0x396   :  { %v266_v6 = vmul.f32 1.442695, %v265_v5 }
 0x398   :  { %769 = vpow2.f32 %v266_v6 }
 0x399   :  { %v213_v9 = vpop.f32.mrf.mxu0  ;;  %771 = vrcp.f32 %v796_v23 }
 0x39a   :  { %v236_v11 = vadd.f32 %v235_v1, %v213_v9 }
 0x39c   :  { %v386_v13 = vadd.f32 %v385_v8, %v236_v11 }
 0x39e   :  { %v770_v14 = vpop.eup %769  ;;  %v388_v15 = vadd.f32 %v386_v13, %v29_v12 }
 0x39f   :  { %v268_v16 = vsel %vm102_vm3, %v770_v14, 0.0  ;;  %v772_v24 = vpop.eup %771 }
 0x3a0   :  { %269 = vadd.xlane.f32.xlu1 %v268_v16  ;;  %v390_v17 = vsel %vm54_vm0, %v388_v15, 0.0  ;;  %v397_v25 = vmul.f32 32.0, %v772_v24  ;;  %vm401_vm4 = vweird.f32 %v772_v24 }
 0x3a1   :  { %v215_v18 = vpop.f32.mrf.mxu0  ;;  %391 = vadd.xlane.f32.xlu0 %v390_v17 }
 0x3a2   :  { %v398_v26 = vsub.f32 1.0, %v397_v25 }
 0x3a4   :  { %v399_v27 = vmul.f32 %v772_v24, %v398_v26 }
 0x3a6   :  { %v400_v28 = vadd.f32 %v772_v24, %v399_v27 }
 0x3a8   :  { %v911_v29 = vsel %vm401_vm4, %v772_v24, %v400_v28  ;;  %vm604_vm4 = vcmask 523264  }
 0x3a9   :  { %v315_v19 = vpop.f32.mrf.mxu0 }
 0x3aa   :  { %v316_v20 = vadd.f32 %v315_v19, %v73_v58 }
 0x3ac   :  { %v319_v21 = vsel %vm102_vm3, %v316_v20, -inf }
 0x3ad   :  { %320 = vmax.xlane.f32.xlu2 %v319_v21 }
 0x3b1   :  { %v317_v22 = vpop.f32.mrf.mxu0 }
 0x3c5   :  { %331 = vrot.lane.b32.xlu2 %v856_v10, %s795_s12 }
 0x413   :  { %v270_v42 = vpop.xlane.xlu1 %269 }
 0x414   :  { %v392_v30 = vpop.xlane.xlu0 %391 }
 0x415   :  { %v403_v31 = vmul.f32 %v911_v29, %v392_v30  ;;  %v441_v30 = vperm.slane %v850_v3, 3 }
 0x417   :  { %v914_v32 = vsub.f32 %v388_v15, %v403_v31 }
 0x419   :  { %v407_v33 = vmul.f32 %v914_v32, %v914_v32 }
 0x41b   :  { %v409_v34 = vsel %vm54_vm0, %v407_v33, 0.0 }
 0x41c   :  { %410 = vadd.xlane.f32.xlu0 %v409_v34 }
 0x420   :  { %v321_v35 = vpop.xlane.xlu2 %320 }
 0x421   :  { %v322_v36 = vsub.f32 %v316_v20, %v321_v35  ;;  %v444_v35 = vperm.slane %v850_v3, 4 }
 0x423   :  { %v323_v37 = vmul.f32 1.442695, %v322_v36 }
 0x425   :  { %773 = vpow2.f32 %v323_v37 }
 0x428   :  { %v332_v38 = vpop.permute.xlu2 %331 }
 0x429   :  { %v337_v39 = vsel %vm120_vm2, %v332_v38, 0 }
 0x42a   :  { %346 = vmatpush.bf16.msra.mxu1 %v337_v39 }
 0x42b   :  { %v774_v40 = vpop.eup %773 }
 0x42c   :  { %v325_v41 = vsel %vm102_vm3, %v774_v40, 0.0 }
 0x42d   :  { %326 = vadd.xlane.f32.xlu1 %v325_v41 }
 0x446   :  { %274 = vrot.lane.b32.xlu1 %v856_v10, %s794_s11 }
 0x48f   :  { %v411_v11 = vpop.xlane.xlu0 %410 }
 0x490   :  { %v415_v12 = vmul.f32 %v411_v11, %v911_v29 }
 0x492   :  { %v417_v7 = vadd.f32 1e-12, %v415_v12 }
 0x494   :  { %vm425_vm6 = vweird.f32 %v417_v7 }
 0x4a0   :  { %v327_v43 = vpop.xlane.xlu1 %326 }
 0x4a1   :  { %775 = vrcp.f32 %v327_v43 }
 0x4a2   :  { %777 = vrcp.f32 %v270_v42 }
 0x4a3   :  { %779 = vrsqrt.f32 %v417_v7 }
 0x4a7   :  { %v776_v44 = vpop.eup %775 }
 0x4a8   :  { %v329_v45 = vmul.f32 %v776_v44, %v774_v40  ;;  %v778_v47 = vpop.eup %777 }
 0x4a9   :  { %v272_v48 = vmul.f32 %v778_v47, %v770_v14  ;;  %v780_v13 = vpop.eup %779  ;;  %v749_v14 = vld [vmem:[%s1008_s4] sm:$0xff] }
 0x4aa   :  { %v330_v46 = vpack.c.bf16 %v329_v45, %v329_v45  ;;  %v420_v15 = vmul.f32 %v780_v13, %v417_v7  ;;  %vm426_vm5 = vweird.f32 %v780_v13 }
 0x4ab   :  { %v273_v51 = vpack.c.bf16 %v272_v48, %v272_v48  ;;  %vm427_vm7 = vmor %vm425_vm6, %vm426_vm5 }
 0x4ac   :  { %713 = vmatmul.msk.bf16.vlgmr.msra.gmra.mxu1 %vm102_vm3, %v330_v46  ;;  %v421_v16 = vmul.f32 %v780_v13, %v420_v15 }
 0x4ae   :  { %v422_v20 = vmul.f32 0.5, %v421_v16 }
 0x4b0   :  { %v423_v21 = vsub.f32 1.5, %v422_v20 }
 0x4b2   :  { %v424_v23 = vmul.f32 %v780_v13, %v423_v21 }
 0x4b4   :  { %v428_v26 = vsel %vm427_vm7, %v780_v13, %v424_v23  ;;  %v752_v13 = vld [vmem:[%s1009_s5 + $0x8] sm:$0xff] }
 0x4b5   :  { %v439_v31 = vmul.f32 %v428_v26, %v914_v32  ;;  %v452_v32 = vperm.slane %v850_v3, 1 }
 0x4b7   :  { %v442_v36 = vmul.f32 %v441_v30, %v439_v31 }
 0x4b8   :  { %v275_v49 = vpop.permute.xlu1 %274 }
 0x4b9   :  { %v280_v50 = vsel %vm120_vm2, %v275_v49, 0  ;;  %v946_v39 = vadd.f32 %v444_v35, %v442_v36 }
 0x4ba   :  { %289 = vmatpush.bf16.msra.mxu2 %v280_v50 }
 0x4bd   :  { %711 = vmatmul.msk.bf16.vlgmr.msra.gmra.mxu2 %vm102_vm3, %v273_v51 }
 0x4be   :  { %379 = vmatpush.bf16.msrb.mxu2 %v887_v52 }
 0x529   :  { %v348_v10 = vpop.f32.mrf.mxu1 }
 0x52a   :  { %v352_v53 = vpack.c.bf16 %v348_v10, %v348_v10 }
 0x52c   :  { %714 = vmatmul.msk.bf16.vlgmr.msra.gmra.mxu3 %vm82_vm1, %v352_v53 }
 0x531   :  { %v350_v54 = vpop.f32.mrf.mxu1 }
 0x540   :  { %v291_v55 = vpop.f32.mrf.mxu2 }
 0x541   :  { %v295_v56 = vpack.c.bf16 %v291_v55, %v291_v55 }
 0x543   :  { %715 = vmatmul.msk.bf16.vlgmr.msrb.gmra.mxu2 %vm82_vm1, %v295_v56 }
 0x548   :  { %v293_v57 = vpop.f32.mrf.mxu2 }
 0x5af   :  { %v365_v58 = vpop.f32.mrf.mxu3 }
 0x5b7   :  { %v367_v59 = vpop.f32.mrf.mxu3 }
 0x5c6   :  { %v381_v60 = vpop.f32.mrf.mxu2 }
 0x5c7   :  { %v382_v61 = vadd.f32 %v381_v60, %v365_v58  ;;  %v754_v60 = vld [vmem:[%s1009_s5 + $0x18] sm:$0xff] }
 0x5c8   :  { %612 = vmatpush.bf16.msrb.mxu1 %v754_v60 }
 0x5c9   :  { %v387_v52 = vadd.f32 %v385_v8, %v382_v61  ;;  %v750_v8 = vld [vmem:[%s1008_s4 + $0x8] sm:$0xff] }
 0x5ca   :  { %474 = vmatpush.bf16.msrb.mxu0 %v750_v8 }
 0x5cb   :  { %v389_v63 = vadd.f32 %v387_v52, %v30_v62 }
 0x5cd   :  { %v393_v0 = vsel %vm54_vm0, %v389_v63, 0.0 }
 0x5ce   :  { %v383_v1 = vpop.f32.mrf.mxu2  ;;  %394 = vadd.xlane.f32.xlu1 %v393_v0  ;;  %475 = vmatpush.bf16.msrb.mxu0 %v749_v14 }
 0x641   :  { %v395_v2 = vpop.xlane.xlu1 %394 }
 0x642   :  { %v404_v4 = vmul.f32 %v911_v29, %v395_v2 }
 0x644   :  { %v406_v5 = vsub.f32 %v389_v63, %v404_v4  ;;  %v753_v4 = vld [vmem:[%s1009_s5 + $0x10] sm:$0xff] }
 0x645   :  { %613 = vmatpush.bf16.msrb.mxu1 %v753_v4 }
 0x646   :  { %v408_v6 = vmul.f32 %v406_v5, %v406_v5 }
 0x648   :  { %v412_v9 = vsel %vm54_vm0, %v408_v6, 0.0 }
 0x649   :  { %413 = vadd.xlane.f32.xlu0 %v412_v9  ;;  %614 = vmatpush.bf16.msrb.mxu1 %v752_v13 }
 0x6bc   :  { %v414_v17 = vpop.xlane.xlu0 %413 }
 0x6bd   :  { %v416_v18 = vmul.f32 %v414_v17, %v911_v29 }
 0x6bf   :  { %v418_v19 = vadd.f32 1e-12, %v416_v18 }
 0x6c1   :  { %781 = vrsqrt.f32 %v418_v19  ;;  %vm435_vm9 = vweird.f32 %v418_v19 }
 0x6c7   :  { %v782_v22 = vpop.eup %781 }
 0x6c8   :  { %v430_v24 = vmul.f32 %v782_v22, %v418_v19  ;;  %vm436_vm8 = vweird.f32 %v782_v22  ;;  %v751_v19 = vld [vmem:[%s1009_s5] sm:$0xff] }
 0x6c9   :  { %vm437_vm10 = vmor %vm435_vm9, %vm436_vm8  ;;  %615 = vmatpush.bf16.msrb.mxu1 %v751_v19  ;;  %vm676_vm8 = vcmask 257024  }
 0x6ca   :  { %v431_v25 = vmul.f32 %v782_v22, %v430_v24 }
 0x6cc   :  { %v432_v27 = vmul.f32 0.5, %v431_v25 }
 0x6ce   :  { %v433_v28 = vsub.f32 1.5, %v432_v27 }
 0x6d0   :  { %v434_v33 = vmul.f32 %v782_v22, %v433_v28 }
 0x6d2   :  { %v438_v34 = vsel %vm437_vm10, %v782_v22, %v434_v33 }
 0x6d3   :  { %v440_v37 = vmul.f32 %v438_v34, %v406_v5 }
 0x6d5   :  { %v443_v38 = vmul.f32 %v441_v30, %v440_v37 }
 0x6d7   :  { %v948_v40 = vadd.f32 %v444_v35, %v443_v38 }
 0x6d9   :  { %v447_v41 = vpack.c.bf16 %v948_v40, %v946_v39 }
 0x6db   :  { %724 = vmatmul.msk.bf16.vlgmr.msrb.gmra.mxu0 %vm54_vm0, %v447_v41 }
 0x758   :  { %v477_v42 = vpop.f32.mrf.mxu0 }
 0x759   :  { %v954_v43 = vadd.f32 %v477_v42, %v452_v32 }
 0x75b   :  { %v957_v44 = vmul.f32 0.70710677, %v954_v43 }
 0x75d   :  { %v486_v45 = vmul.f32 %v957_v44, %v957_v44 }
 0x75f   :  { %v487_v46 = vmin.f32 %v486_v45, 16.0 }
 0x760   :  { %v479_v47 = vpop.f32.mrf.mxu0 }
 0x761   :  { %v488_v48 = vmul.f32 2.1237322e-06, %v487_v46  ;;  %v499_v49 = vmul.f32 3.8918573e-05, %v487_v46  ;;  %v961_v50 = vadd.f32 %v479_v47, %v452_v32 }
 0x763   :  { %v489_v51 = vadd.f32 0.00028619796, %v488_v48  ;;  %v500_v10 = vadd.f32 0.001143296, %v499_v49  ;;  %v964_v53 = vmul.f32 0.70710677, %v961_v50 }
 0x765   :  { %v501_v54 = vmul.f32 %v500_v10, %v487_v46  ;;  %v526_v55 = vmul.f32 %v964_v53, %v964_v53  ;;  %v490_v56 = vmul.f32 %v489_v51, %v487_v46 }
 0x767   :  { %v502_v57 = vadd.f32 0.014752088, %v501_v54  ;;  %v527_v58 = vmin.f32 %v526_v55, 16.0  ;;  %v491_v52 = vadd.f32 0.0036580483, %v490_v56 }
 0x769   :  { %v503_v59 = vmul.f32 %v502_v57, %v487_v46  ;;  %v528_v61 = vmul.f32 2.1237322e-06, %v527_v58  ;;  %v539_v62 = vmul.f32 3.8918573e-05, %v527_v58  ;;  %v492_v9 = vmul.f32 %v491_v52, %v487_v46 }
 0x76b   :  { %v504_v63 = vadd.f32 0.112945676, %v503_v59  ;;  %v529_v0 = vadd.f32 0.00028619796, %v528_v61  ;;  %v540_v1 = vadd.f32 0.001143296, %v539_v62 }
 0x76c   :  { %v493_v15 = vadd.f32 0.05243302, %v492_v9 }
 0x76d   :  { %v505_v2 = vmul.f32 %v504_v63, %v487_v46  ;;  %v530_v5 = vmul.f32 %v529_v0, %v527_v58  ;;  %v541_v6 = vmul.f32 %v540_v1, %v527_v58  ;;  %v482_v1 = vmul.f32 0.5, %v954_v43 }
 0x76e   :  { %v494_v21 = vmul.f32 %v493_v15, %v487_v46 }
 0x76f   :  { %v506_v11 = vadd.f32 0.4994258, %v505_v2  ;;  %v531_v12 = vadd.f32 0.0036580483, %v530_v5  ;;  %v542_v7 = vadd.f32 0.014752088, %v541_v6 }
 0x770   :  { %v495_v26 = vadd.f32 0.18741608, %v494_v21  ;;  %v483_v2 = vmul.f32 0.5, %v961_v50 }
 0x771   :  { %v507_v8 = vmul.f32 %v506_v11, %v487_v46  ;;  %v543_v14 = vmul.f32 %v542_v7, %v527_v58  ;;  %v532_v17 = vmul.f32 %v531_v12, %v527_v58  ;;  %v579_v11 = vperm.slane %v850_v3, 5 }
 0x772   :  { %v496_v33 = vmul.f32 %v495_v26, %v487_v46 }
 0x773   :  { %v508_v16 = vadd.f32 1.0, %v507_v8  ;;  %v544_v18 = vadd.f32 0.112945676, %v543_v14  ;;  %v533_v22 = vadd.f32 0.05243302, %v532_v17 }
 0x774   :  { %v497_v41 = vadd.f32 1.1283791, %v496_v33 }
 0x775   :  { %783 = vrcp.f32 %v508_v16  ;;  %v545_v20 = vmul.f32 %v544_v18, %v527_v58  ;;  %v534_v28 = vmul.f32 %v533_v22, %v527_v58  ;;  %v520_v35 = vand.u32 2147483648, %v508_v16 }
 0x776   :  { %v518_v37 = vand.u32 2147483647, %v508_v16  ;;  %vm514_vm12 = vweird.f32 %v508_v16  ;;  %v498_v51 = vmul.f32 %v497_v41, %v957_v44  ;;  %v668_v41 = vperm.slane %v850_v3, 6 }
 0x777   :  { %v546_v23 = vadd.f32 0.4994258, %v545_v20  ;;  %v535_v36 = vadd.f32 0.18741608, %v534_v28  ;;  %v521_v45 = vor.u32 1.1754944e-38, %v520_v35 }
 0x778   :  { %vm519_vm14 = vcmp.eq.f32.partialorder %v518_v37, 8.507059e+37 }
 0x779   :  { %v547_v24 = vmul.f32 %v546_v23, %v527_v58  ;;  %v536_v47 = vmul.f32 %v535_v36, %v527_v58 }
 0x77b   :  { %v784_v25 = vpop.eup %783  ;;  %v548_v30 = vadd.f32 1.0, %v547_v24  ;;  %v537_v46 = vadd.f32 1.1283791, %v536_v47 }
 0x77c   :  { %v510_v27 = vmul.f32 %v784_v25, %v508_v16  ;;  %vm515_vm11 = vweird.f32 %v784_v25 }
 0x77d   :  { %785 = vrcp.f32 %v548_v30  ;;  %vm516_vm13 = vmor %vm514_vm12, %vm515_vm11  ;;  %v560_v54 = vand.u32 2147483648, %v548_v30  ;;  %v558_v57 = vand.u32 2147483647, %v548_v30  ;;  %vm554_vm1 = vweird.f32 %v548_v30 }
 0x77e   :  { %v511_v31 = vsub.f32 1.0, %v510_v27  ;;  %v538_v62 = vmul.f32 %v537_v46, %v964_v53 }
 0x77f   :  { %v561_v60 = vor.u32 1.1754944e-38, %v560_v54  ;;  %vm559_vm3 = vcmp.eq.f32.partialorder %v558_v57, 8.507059e+37 }
 0x780   :  { %v512_v34 = vmul.f32 %v784_v25, %v511_v31 }
 0x782   :  { %v513_v38 = vadd.f32 %v784_v25, %v512_v34 }
 0x783   :  { %v786_v32 = vpop.eup %785 }
 0x784   :  { %v517_v42 = vsel %vm516_vm13, %v784_v25, %v513_v38  ;;  %v550_v48 = vmul.f32 %v786_v32, %v548_v30  ;;  %vm555_vm15 = vweird.f32 %v786_v32 }
 0x785   :  { %v522_v49 = vsel %vm519_vm14, %v521_v45, %v517_v42  ;;  %vm556_vm2 = vmor %vm554_vm1, %vm555_vm15  ;;  %v671_v45 = vperm.slane %v850_v3, 7 }
 0x786   :  { %v551_v10 = vsub.f32 1.0, %v550_v48  ;;  %v523_v55 = vmul.f32 %v522_v49, %v498_v51 }
 0x788   :  { %v552_v56 = vmul.f32 %v786_v32, %v551_v10  ;;  %v725_v61 = vclamps-f32 %v523_v55, 1.0 }
 0x78a   :  { %v553_v59 = vadd.f32 %v786_v32, %v552_v56  ;;  %v566_v0 = vadd.f32 1.0, %v725_v61 }
 0x78c   :  { %v557_v58 = vsel %vm556_vm2, %v786_v32, %v553_v59  ;;  %v568_v5 = vmul.f32 %v566_v0, %v482_v1 }
 0x78d   :  { %v562_v52 = vsel %vm559_vm3, %v561_v60, %v557_v58 }
 0x78e   :  { %v563_v63 = vmul.f32 %v562_v52, %v538_v62 }
 0x790   :  { %v726_v44 = vclamps-f32 %v563_v63, 1.0 }
 0x792   :  { %v567_v4 = vadd.f32 1.0, %v726_v44 }
 0x794   :  { %v569_v6 = vmul.f32 %v567_v4, %v483_v2 }
 0x796   :  { %v570_v9 = vpack.c.bf16 %v569_v6, %v568_v5 }
 0x798   :  { %743 = vmatmul.msk.bf16.vlgmr.msrb.gmra.mxu1 %vm604_vm4, %v570_v9 }
 0x815   :  { %v617_v12 = vpop.f32.mrf.mxu1 }
 0x816   :  { %v618_v53 = vadd.f32 %v617_v12, %v579_v11 }
 0x818   :  { %v622_v7 = vadd.f32 %v618_v53, %v946_v39 }
 0x81a   :  { %v624_v8 = vsel %vm54_vm0, %v622_v7, 0.0 }
 0x81b   :  { %625 = vadd.xlane.f32.xlu2 %v624_v8 }
 0x81d   :  { %v619_v13 = vpop.f32.mrf.mxu1 }
 0x81e   :  { %v620_v14 = vadd.f32 %v619_v13, %v579_v11 }
 0x820   :  { %v623_v43 = vadd.f32 %v620_v14, %v948_v40 }
 0x822   :  { %v627_v50 = vsel %vm54_vm0, %v623_v43, 0.0 }
 0x823   :  { %628 = vadd.xlane.f32.xlu0 %v627_v50 }
 0x88e   :  { %v626_v15 = vpop.xlane.xlu2 %625 }
 0x88f   :  { %v630_v16 = vmul.f32 %v626_v15, %v911_v29 }
 0x891   :  { %v632_v17 = vsub.f32 %v622_v7, %v630_v16 }
 0x893   :  { %v634_v18 = vmul.f32 %v632_v17, %v632_v17 }
 0x895   :  { %v636_v19 = vsel %vm54_vm0, %v634_v18, 0.0 }
 0x896   :  { %v629_v20 = vpop.xlane.xlu0 %628  ;;  %637 = vadd.xlane.f32.xlu0 %v636_v19 }
 0x897   :  { %v631_v39 = vmul.f32 %v629_v20, %v911_v29 }
 0x899   :  { %v633_v21 = vsub.f32 %v623_v43, %v631_v39 }
 0x89b   :  { %v635_v22 = vmul.f32 %v633_v21, %v633_v21 }
 0x89d   :  { %v639_v23 = vsel %vm54_vm0, %v635_v22, 0.0 }
 0x89e   :  { %640 = vadd.xlane.f32.xlu0 %v639_v23 }
 0x909   :  { %v638_v40 = vpop.xlane.xlu0 %637 }
 0x90a   :  { %v642_v24 = vmul.f32 %v638_v40, %v911_v29 }
 0x90c   :  { %v644_v25 = vadd.f32 1e-12, %v642_v24 }
 0x90e   :  { %787 = vrsqrt.f32 %v644_v25  ;;  %vm652_vm0 = vweird.f32 %v644_v25 }
 0x911   :  { %v641_v26 = vpop.xlane.xlu0 %640 }
 0x912   :  { %v643_v27 = vmul.f32 %v641_v26, %v911_v29 }
 0x914   :  { %v788_v28 = vpop.eup %787  ;;  %v645_v30 = vadd.f32 1e-12, %v643_v27 }
 0x915   :  { %v647_v31 = vmul.f32 %v788_v28, %v644_v25  ;;  %vm653_vm5 = vweird.f32 %v788_v28 }
 0x916   :  { %789 = vrsqrt.f32 %v645_v30  ;;  %vm654_vm6 = vmor %vm652_vm0, %vm653_vm5  ;;  %vm662_vm9 = vweird.f32 %v645_v30 }
 0x917   :  { %v648_v33 = vmul.f32 %v788_v28, %v647_v31 }
 0x919   :  { %v649_v34 = vmul.f32 0.5, %v648_v33 }
 0x91b   :  { %v650_v35 = vsub.f32 1.5, %v649_v34 }
 0x91c   :  { %v790_v36 = vpop.eup %789 }
 0x91d   :  { %v651_v37 = vmul.f32 %v788_v28, %v650_v35  ;;  %v657_v38 = vmul.f32 %v790_v36, %v645_v30  ;;  %vm663_vm7 = vweird.f32 %v790_v36 }
 0x91e   :  { %vm664_vm10 = vmor %vm662_vm9, %vm663_vm7 }
 0x91f   :  { %v655_v32 = vsel %vm654_vm6, %v788_v28, %v651_v37  ;;  %v658_v42 = vmul.f32 %v790_v36, %v657_v38 }
 0x920   :  { %v666_v29 = vmul.f32 %v655_v32, %v632_v17 }
 0x921   :  { %v659_v47 = vmul.f32 0.5, %v658_v42 }
 0x922   :  { %v669_v48 = vmul.f32 %v668_v41, %v666_v29 }
 0x923   :  { %v660_v49 = vsub.f32 1.5, %v659_v47 }
 0x924   :  { %v672_v51 = vadd.f32 %v671_v45, %v669_v48 }
 0x925   :  { %v661_v10 = vmul.f32 %v790_v36, %v660_v49 }
 0x926   :  { %v674_v46 = vpack.c.bf16 %v672_v51, %v672_v51 }
 0x927   :  { %v665_v54 = vsel %vm664_vm10, %v790_v36, %v661_v10 }
 0x928   :  { %677 = vst.msk [vmem:[%s1010_s7] sm:$0xf] %vm676_vm8, %v674_v46  ;;  %v667_v55 = vmul.f32 %v665_v54, %v633_v21 }
 0x92a   :  { %v670_v56 = vmul.f32 %v668_v41, %v667_v55 }
 0x92c   :  { %v673_v57 = vadd.f32 %v671_v45, %v670_v56 }
 0x92e   :  { %v675_v3 = vpack.c.bf16 %v673_v57, %v673_v57 }
 0x930   :  { %678 = vst.msk [vmem:[%s1010_s7 + $0x4] sm:$0xf] %vm676_vm8, %v675_v3 }

</bundles_post_ra>
